<compile_context>
chip_gen: v7x
topology: tpu7x:2x2x1
jax: 0.10.0
libtpu: 0.0.40
codegen_flags: <defaults>
</compile_context>

<pallas_src>
import math

import jax
import jax.numpy as jnp
from jax.experimental import pallas as pl
from jax.experimental.pallas import tpu as pltpu


def _round_up(x, m):
    return (x + m - 1) // m * m


def _cdiv(a, b):
    return (a + b - 1) // b


def _sin_pe_kernel(time_ref, freqs_ref, phase_ref, out_ref):
    # time_ref: (TR, 1) [direct layout] or (TR, W) [packed layout]
    # freqs_ref, phase_ref: (1, W) f32; out_ref: (TR, W)
    out_ref[...] = jnp.sin(
        time_ref[...] * freqs_ref[...] + phase_ref[...]
    ).astype(out_ref.dtype)


def sinusoidal_position_encoding(time, dim, *, out_dtype=jnp.float32,
                                 max_rows_per_step=512,
                                 min_pallas_elems=16384):
    """time: (B,) float array -> (B, dim) sinusoidal embedding (torch-compatible).

    out[:, :dim//2] = sin(t * f), out[:, dim//2:] = cos(t * f) = sin(t * f + pi/2).
    Pass out_dtype=jnp.bfloat16 if the consumer takes bf16 (halves HBM writeback).
    """
    assert dim % 2 == 0 and dim >= 4, "dim must be even and >= 4"
    half = dim // 2
    B = time.shape[0]

    t = time.astype(jnp.float32).reshape(B)

    # Hoisted, compile-time-static tables: freqs duplicated for both halves,
    # phase = 0 on the sin half, pi/2 on the cos half (exact f32 constant).
    scale = math.log(10000.0) / (half - 1)
    freqs_half = jnp.exp(jnp.arange(half, dtype=jnp.float32) * -scale)   # (half,)
    freqs_row = jnp.concatenate([freqs_half, freqs_half])                # (dim,)
    phase_row = jnp.concatenate(
        [jnp.zeros((half,), jnp.float32),
         jnp.full((half,), math.pi / 2, jnp.float32)])                   # (dim,)

    # Tiny problems: fixed pallas_call dispatch + per-step overhead dwarf the
    # actual work; let XLA fuse the plain expression instead.
    if B * dim < min_pallas_elems:
        return jnp.sin(t[:, None] * freqs_row[None, :] + phase_row[None, :]).astype(out_dtype)

    # ---- layout selection ---------------------------------------------------
    # dim < 128: pack g = 128 // dim batch rows per 128-lane group so stores are
    # unmasked and EUP/VPU lane utilization is 100%. The (rows, 128) output is
    # row-major identical to (B_pad, dim), so the reshape back is free.
    if dim < 128 and 128 % dim == 0:
        g = 128 // dim
        W = 128
    else:
        g = 1
        W = dim
    out_itemsize = jnp.dtype(out_dtype).itemsize

    # ---- row tiling -----------------------------------------------------------
    rows_min = _cdiv(B, g)
    # VMEM guard (v5e default scoped VMEM is 16 MiB): double-buffered out + in.
    in_w = W if g > 1 else 1
    per_row_bytes = 2 * (W * out_itemsize + in_w * 4)
    vmem_budget = 8 * 1024 * 1024
    tr_cap = max(8, min(max_rows_per_step, (vmem_budget // per_row_bytes) // 8 * 8))
    # >= 2 grid steps whenever possible so the "parallel" axis can shard across
    # both v7x TensorCores (no effect on single-TC v5e/v6e).
    steps = max(2 if rows_min > 8 else 1, _cdiv(rows_min, tr_cap))
    tr = _round_up(_cdiv(rows_min, steps), 8)
    rows_pad = steps * tr
    b_pad = rows_pad * g

    # ---- kernel inputs in the chosen layout ----------------------------------
    t_pad = jnp.pad(t, (0, b_pad - B)) if b_pad > B else t
    if g > 1:
        # time expanded along lanes (XLA-side, cheap), freqs/phase tiled g times.
        time_in = jnp.repeat(t_pad, dim).reshape(rows_pad, W)
        freqs_in = jnp.tile(freqs_row, g).reshape(1, W)
        phase_in = jnp.tile(phase_row, g).reshape(1, W)
    else:
        time_in = t_pad.reshape(rows_pad, 1)
        freqs_in = freqs_row.reshape(1, W)
        phase_in = phase_row.reshape(1, W)

    cost = pl.CostEstimate(
        flops=2 * rows_pad * W,                     # mul + add per element
        transcendentals=rows_pad * W,               # one sin per element
        bytes_accessed=(time_in.size * 4 + 2 * W * 4 + rows_pad * W * out_itemsize),
    )

    out = pl.pallas_call(
        _sin_pe_kernel,
        out_shape=jax.ShapeDtypeStruct((rows_pad, W), out_dtype),
        grid=(steps,),
        in_specs=[
            pl.BlockSpec((tr, in_w), lambda i: (i, 0)),
            pl.BlockSpec((1, W), lambda i: (0, 0)),
            pl.BlockSpec((1, W), lambda i: (0, 0)),
        ],
        out_specs=pl.BlockSpec((tr, W), lambda i: (i, 0)),
        compiler_params=pltpu.CompilerParams(dimension_semantics=("parallel",)),
        cost_estimate=cost,
    )(time_in, freqs_in, phase_in)

    # (rows_pad, W) row-major == (b_pad, dim) row-major: free reshape, then slice.
    out = out.reshape(b_pad, dim)
    return out[:B] if b_pad != B else out


def _reference(time, dim):
    half = dim // 2
    scale = jnp.log(jnp.float32(10000.0)) / (half - 1)
    freqs = jnp.exp(jnp.arange(half, dtype=jnp.float32) * -scale)
    args = time.astype(jnp.float32)[:, None] * freqs[None, :]
    return jnp.concatenate([jnp.sin(args), jnp.cos(args)], axis=-1)


if __name__ == "__main__":
    key = jax.random.PRNGKey(0)
    k1, k2, k3 = jax.random.split(key, 3)

    # 1) Module-typical tiny call (B=8, dim=32): takes the fused-XLA fallback.
    B1, d1 = 8, 32
    t1 = jax.random.uniform(k1, (B1,), jnp.float32) * 100.0
    o1 = jax.block_until_ready(sinusoidal_position_encoding(t1, d1))
    assert o1.shape == (B1, d1) and o1.dtype == jnp.float32
    assert jnp.allclose(o1, _reference(t1, d1), atol=2e-4, rtol=1e-4)

    # 2) Pallas path, packed lane-dense layout (dim < 128), ragged batch.
    B2, d2 = 200, 32
    t2 = jax.random.uniform(k2, (B2,), jnp.float32) * 100.0
    o2 = jax.block_until_ready(
        sinusoidal_position_encoding(t2, d2, min_pallas_elems=0))
    assert o2.shape == (B2, d2) and o2.dtype == jnp.float32
    assert jnp.allclose(o2, _reference(t2, d2), atol=2e-4, rtol=1e-4)

    # 3) Pallas path, direct layout (dim >= 128).
    B3, d3 = 64, 256
    t3 = jax.random.uniform(k3, (B3,), jnp.float32) * 100.0
    o3 = jax.block_until_ready(
        sinusoidal_position_encoding(t3, d3, min_pallas_elems=0))
    assert o3.shape == (B3, d3) and o3.dtype == jnp.float32
    assert jnp.allclose(o3, _reference(t3, d3), atol=2e-4, rtol=1e-4)

    print("KERNEL_OK")
</pallas_src>

<mosaic_0001>
module attributes {stable_mosaic.version = 11 : i64} {
  func.func @_sin_pe_kernel(%arg0: i32, %arg1: memref<32x128xf32, #tpu.memory_space<vmem>>, %arg2: memref<1x128xf32, #tpu.memory_space<vmem>>, %arg3: memref<1x128xf32, #tpu.memory_space<vmem>>, %arg4: memref<32x128xf32, #tpu.memory_space<vmem>>) attributes {dimension_semantics = [#tpu.dimension_semantics<parallel>], iteration_bounds = array<i64: 2>, scalar_prefetch = 0 : i64, scratch_operands = 0 : i64, tpu.core_type = #tpu.core_type<tc>, window_params = [{transform_indices = @transform_0, window_bounds = array<i64: 32, 128>}, {pipeline_mode = #tpu.pipeline_mode<synchronous>, transform_indices = @transform_1, window_bounds = array<i64: 1, 128>}, {pipeline_mode = #tpu.pipeline_mode<synchronous>, transform_indices = @transform_2, window_bounds = array<i64: 1, 128>}, {transform_indices = @transform_3, window_bounds = array<i64: 32, 128>}]} {
    %c0 = arith.constant 0 : index
    %c0_0 = arith.constant 0 : index
    %0 = vector.load %arg1[%c0, %c0_0] : memref<32x128xf32, #tpu.memory_space<vmem>>, vector<32x128xf32>
    %c0_1 = arith.constant 0 : index
    %c0_2 = arith.constant 0 : index
    %1 = vector.load %arg2[%c0_1, %c0_2] : memref<1x128xf32, #tpu.memory_space<vmem>>, vector<1x128xf32>
    %2 = vector.broadcast %1 : vector<1x128xf32> to vector<32x128xf32>
    %3 = arith.mulf %0, %2 : vector<32x128xf32>
    %c0_3 = arith.constant 0 : index
    %c0_4 = arith.constant 0 : index
    %4 = vector.load %arg3[%c0_3, %c0_4] : memref<1x128xf32, #tpu.memory_space<vmem>>, vector<1x128xf32>
    %5 = vector.broadcast %4 : vector<1x128xf32> to vector<32x128xf32>
    %6 = arith.addf %3, %5 : vector<32x128xf32>
    %7 = math.sin %6 : vector<32x128xf32>
    %c0_5 = arith.constant 0 : index
    %c0_6 = arith.constant 0 : index
    %8 = vector.load %arg4[%c0_5, %c0_6] : memref<32x128xf32, #tpu.memory_space<vmem>>, vector<32x128xf32>
    tpu.vector_store %arg4[%c0_5, %c0_6], %7 {strides = array<i32>} : memref<32x128xf32, #tpu.memory_space<vmem>>, vector<32x128xf32>,
    return
  }
  func.func @transform_0(%arg0: i32) -> (i32, i32) {
    %c0_i32 = arith.constant 0 : i32
    %c0_i32_0 = arith.constant 0 : i32
    return %arg0, %c0_i32 : i32, i32
  }
  func.func @transform_1(%arg0: i32) -> (i32, i32) {
    %c0_i32 = arith.constant 0 : i32
    %c0_i32_0 = arith.constant 0 : i32
    %c0_i32_1 = arith.constant 0 : i32
    return %c0_i32, %c0_i32_0 : i32, i32
  }
  func.func @transform_2(%arg0: i32) -> (i32, i32) {
    %c0_i32 = arith.constant 0 : i32
    %c0_i32_0 = arith.constant 0 : i32
    %c0_i32_1 = arith.constant 0 : i32
    return %c0_i32, %c0_i32_0 : i32, i32
  }
  func.func @transform_3(%arg0: i32) -> (i32, i32) {
    %c0_i32 = arith.constant 0 : i32
    %c0_i32_0 = arith.constant 0 : i32
    return %arg0, %c0_i32 : i32, i32
  }
}

</mosaic_0001>

<bundles_post_ra>
// kernel: tpu_custom_call.1
= control target key start
LH: loop header
LB: loop body
LE: loop exit
PB: predicated region body
PF: predicated region fallthrough
CT: control target
= control target key end

     0   :  { %8 = vsyncpa [#allocation3], 0  ;;  %s1467_s0 = inlined_call_operand.hbm [shape: f32[64,128], index: 0, kind: input, shape index: {}]   ;;  %s1468_s1 = inlined_call_operand.vmem [shape: f32[1,128], index: 1, kind: input, shape index: {}]   ;;  %s1469_s2 = inlined_call_operand.vmem [shape: f32[1,128], index: 2, kind: input, shape index: {}]   ;;  %s1470_s3 = inlined_call_operand.hbm [shape: f32[64,128], index: 3, kind: output, shape index: {}]  }
   0x1   :  { %10 = vsyncpa [#allocation3 + $0x1], 0 }
   0x2   :  { %11 = vsyncpa [#allocation4], 0 }
   0x3   :  { %13 = vsyncpa [#allocation4 + $0x1], 0  ;;  %s976_s12 = smov 0   ;;  %s978_s13 = smov 0  }
   0x4   :  { %s980_s14 = smov 0   ;;  %s982_s15 = smov 0  }
   0x5 LB: > { %s997_s16 = sadd.s32 4294967295, %s942_s15   ;;  %s724_s17 = sadd.s32 4294967294, %s942_s15   ;;  %s942_s15 = sphi %s982_s15, %s1487_s15   ;;  %s938_s14 = sphi %s980_s14, %s1486_s14   ;;  %s934_s13 = sphi %s978_s13, %s1485_s13   ;;  %s930_s12 = sphi %s976_s12, %s1484_s12  }
   0x6   : > { %s1001_s18 = sadd.s32 1, %s942_s15   ;;  %s26_s19 = sadd.s32 1, %s938_s14 }
   0x7   : > { %s23_s20 = ssub.s32 %s942_s15, %s1001_s18  ;;  %p33_p0 = scmp.ne.s32.totalorder %s938_s14, %s934_s13 }
   0x8   : > { %p24_p1 = scmp.eq.s32.totalorder %s23_s20, 0  ;;  %p34_p2 = scmp.eq.s32.totalorder %s942_s15, 0 }
   0x9   : > { %p39_p3 = scmp.ne.s32.totalorder %s934_s13, %s930_s12  ;;  %p40_p4 = scmp.eq.s32.totalorder %s997_s16, 0 }
   0xa   : > { %s1013_s21 = scalar_select %p24_p1, %s938_s14, %s26_s19  }
   0xb   : > { %p1015_p5 = por %p34_p2, %p33_p0  ;;  %p1019_p6 = por %p40_p4, %p39_p3 }
   0xc   : > { %p105_p7 = scmp.eq.s32.totalorder %s997_s16, 1  ;;  %p111_p8 = scmp.eq.s32.totalorder %s724_s17, 1 }
   0xd   : > { %p786_p10 = scmp.lt.s32.totalorder %s942_s15, 2  ;;  %s137_s26 = sand.u32 1, %s938_s14  }
   0xe   : > { %p1026_p11 = por %p105_p7, %p33_p0  ;;  %p1030_p12 = por %p111_p8, %p39_p3 }
   0xf   : > { %s756_s27 = sshll.u32 %s942_s15, 9  ;;  %s727_s28 = sshll.u32 %s137_s26, 5 }
  0x10   : > { %s1474_s24 = scalar_select %p1026_p11, 1, 0 }
  0x11   : > { %s1475_s25 = scalar_select %p1030_p12, 1, 0 }
  0x12   : > { %s1039_s4 = scalar_lea.hbm %s1467_s0, %s756_s27  ;;  %s141_s5 = scalar_lea.vmem [#allocation2], %s727_s28 }
  0x13   : > { %s148_s6 = sshll.u32 %s141_s5, 4  ;;  %p1043_p13 = pnand %p786_p10, %p1015_p5  ;;  %s1047_s6 = int_to_ptr.vmem [resolvable:$true] %s148_s6 }
  0x14   : > { %s1049_s8 = scalar_lea.sflag [#allocation3], %s137_s26  ;;  %s846_s9 = scalar_lea.hbm %s1039_s4, 512 }
  0x15   : > { %p847_p0 = scmp.ne.s32.totalorder %s1039_s4, %s846_s9  ;;  %p848_p1 = pneg %p1043_p13 }
  0x16   : > { %s851_s17 = scalar_lea.hbm %s1467_s0, 1024  ;;  %p852_p4 = scmp.lt.u32.totalorder %s1039_s4, %s1467_s0 }
  0x17   : > { %p849_p2 = pnand %p848_p1, %p847_p0  ;;  %p853_p5 = scmp.lt.u32.totalorder %s851_s17, %s846_s9 }
  0x18   : > { %p855_p8 = scmp.lt.u32.totalorder %s846_s9, %s1039_s4 }
  0x19   : > { %p850_p3 = pneg %p849_p2  ;;  %p854_p7 = por %p853_p5, %p852_p4 }
  0x1b   : > { %p856_p10 = por %p855_p8, %p854_p7 }
  0x1d   : > { %p857_p9 = pnand %p856_p10, %p850_p3 }
  0x1f   : > { %860 = shalt.err (!%p857_p9)
}
  0x20   : > { %s861_s22 = scalar_lea.vmem %s1047_s6, 512  ;;  %s944_s26 = smov [#allocation2]  }
  0x21   : > { %p862_p0 = scmp.ne.s32.totalorder %s1047_s6, %s861_s22  ;;  %s866_s27 = sshll.u32 %s944_s26, 4  ;;  %s867_s27 = int_to_ptr.vmem [resolvable:$false] %s866_s27 }
  0x22   : > { %s868_s28 = scalar_lea.vmem %s867_s27, 1024  ;;  %p869_p11 = scmp.lt.s32.totalorder %s1047_s6, %s867_s27 }
  0x23   : > { %p864_p2 = pnand %p862_p0, %p848_p1  ;;  %p870_p4 = scmp.lt.s32.totalorder %s868_s28, %s861_s22 }
  0x25   : > { %p865_p12 = pneg %p864_p2  ;;  %p871_p5 = por %p870_p4, %p869_p11 }
  0x27   : > { %p872_p7 = pnand %p871_p5, %p865_p12 }
  0x29   : > { %875 = shalt.err (!%p872_p7)
}
  0x2a   : > { %s945_s29 = smov 128   ;;  %s946_s30 = smov 8  }
  0x2b   : > { %781 = dma.hbm_to_vmem [thread:$0]  (!%p1043_p13), %s1039_s4, 512, %s1047_s6, %s1049_s8, %s945_s29, %s945_s29, %s946_s30  }
  0x2c   : > { %p730_p9 = scmp.ge.s32.totalorder %s942_s15, 1  ;;  %p156_p1 = scmp.lt.s32.totalorder %s942_s15, 3 }
  0x2e   : > { %p157_p3 = pnand %p730_p9, %p156_p1 }
  0x2f   : > { %s1080_s5 = sand.u32 (!%p157_p3), 1, %s934_s13  }
  0x30   : > { %160 = sbr.rel (%p157_p3) target bundleno = 211 (0xd3), region = 32  ;;  %s731_s9 = sshll.u32 (!%p157_p3), %s1080_s5, 5 }
  0x31   : > { %s163_s10 = scalar_lea.sflag (!%p157_p3), [#allocation3], %s1080_s5  ;;  %s166_s11 = scalar_lea.vmem (!%p157_p3), [#allocation2], %s731_s9 }
  0x37   : > { %921 = dma.done.wait (%p1019_p6), %s163_s10, 512  }
  0x38   : > { %923 = vsyncadd (%p1019_p6), %s163_s10, 4294966784  ;;  %v191_v0 = vld [vmem:[%s166_s11] sm:$0xff]  ;;  %v192_v1 = vld [vmem:[%s166_s11 + $0x8] sm:$0xff]  ;;  %v947_v41 = vmov 683565275   ;;  %s1394_s23 = scalar_lea.vmem [#allocation5], %s731_s9 }
  0x39   : > { %v193_v2 = vld [vmem:[%s166_s11 + $0x10] sm:$0xff]  ;;  %v733_v3 = vld [vmem:[%s1468_s1] ss:$0 sm:$0xff]  ;;  %v194_v23 = vld [vmem:[%s166_s11 + $0x18] sm:$0xff]  ;;  %v948_v43 = vmov 2475754826  }
  0x3a   : > { %v1096_v4 = vld [vmem:[%s1469_s2] ss:$0 sm:$0xff]  ;;  %v202_v5 = vmul.f32 %v733_v3, %v191_v0  ;;  %v203_v6 = vmul.f32 %v733_v3, %v192_v1  ;;  %v204_v7 = vmul.f32 %v733_v3, %v193_v2  ;;  %v1117_v30 = vmul.f32 %v733_v3, %v194_v23  ;;  %s757_s17 = sshll.u32 %s997_s16, 9  ;;  %s651_s19 = sshll.u32 %s1394_s23, 4  ;;  %s1422_s19 = int_to_ptr.vmem [resolvable:$true] %s651_s19 }
  0x3b   : > { %v949_v45 = vmov 2131351028   ;;  %v950_v47 = vmov 2102212464   ;;  %v951_v49 = vmov 920167782   ;;  %s1420_s26 = scalar_lea.hbm %s1470_s3, %s757_s17 }
  0x3c   : > { %v1099_v8 = vadd.f32 %v1096_v4, %v202_v5  ;;  %v1102_v9 = vadd.f32 %v1096_v4, %v203_v6  ;;  %v1105_v10 = vadd.f32 %v1096_v4, %v204_v7  ;;  %v952_v57 = vmov 1326507024   ;;  %s638_s16 = scalar_lea.sflag [#allocation4], %s1080_s5  ;;  %s876_s27 = scalar_lea.vmem %s1422_s19, 512 }
  0x3d   : > { %p877_p6 = scmp.ne.s32.totalorder %s1422_s19, %s876_s27  ;;  %p1481_p11 = scmp.ne.s32.totalorder %s1474_s24, 0 }
  0x3e   : > { %v217_v11 = vand.u32 2147483647, %v1099_v8  ;;  %v220_v12 = vand.u32 2139095040, %v1099_v8  ;;  %v321_v13 = vand.u32 2147483647, %v1102_v9  ;;  %v324_v14 = vand.u32 2139095040, %v1102_v9 }
  0x3f   : > { %v428_v19 = vand.u32 2139095040, %v1105_v10  ;;  %v425_v28 = vand.u32 2147483647, %v1105_v10  ;;  %vm219_vm13 = vcmp.lt.s32.totalorder %v1099_v8, 0  ;;  %p878_p12 = pnand %p877_p6, %p1481_p11  ;;  %s953_s28 = smov [#allocation5]  }
  0x40   : > { %v221_v15 = vshrl.u32 %v220_v12, 23  ;;  %v224_v16 = vand.u32 8388607, %v217_v11  ;;  %v325_v17 = vshrl.u32 %v324_v14, 23  ;;  %v328_v18 = vand.u32 8388607, %v321_v13 }
  0x41   : > { %v429_v22 = vshrl.u32 %v428_v19, 23  ;;  %v1125_v38 = vand.u32 8388607, %v425_v28  ;;  %vm1235_vm15 = vcmp.le.f32.partialorder %v217_v11, 0.7853982  ;;  %p879_p13 = pneg %p878_p12  ;;  %s880_s29 = sshll.u32 %s953_s28, 4  ;;  %s881_s29 = int_to_ptr.vmem [resolvable:$false] %s880_s29 }
  0x42   : > { %v735_v20 = vadd.s32 4294967169, %v221_v15  ;;  %v739_v21 = vadd.s32 4294967169, %v325_v17  ;;  %v225_v24 = vor.u32 8388608, %v224_v16  ;;  %v329_v26 = vor.u32 8388608, %v328_v18  ;;  %s882_s30 = scalar_lea.vmem %s881_s29, 1024  ;;  %p883_p8 = scmp.lt.s32.totalorder %s1422_s19, %s881_s29 }
  0x43   : > { %v743_v29 = vadd.s32 4294967169, %v429_v22  ;;  %p884_p10 = scmp.lt.s32.totalorder %s882_s30, %s876_s27 }
  0x44   : > { %v227_v25 = vadd.s32 1, %v735_v20  ;;  %v331_v27 = vadd.s32 1, %v739_v21  ;;  %v1119_v34 = vshll.u32 %v225_v24, 8  ;;  %v1121_v37 = vshll.u32 %v329_v26, 8 }
  0x45   : > { %v1127_v39 = vadd.s32 1, %v743_v29  ;;  %p885_p0 = por %p884_p10, %p883_p8 }
  0x46   : > { %vm228_vm0 = vcmp.gt.s32.totalorder %v227_v25, 0  ;;  %vm332_vm1 = vcmp.gt.s32.totalorder %v331_v27, 0 }
  0x47   : > { %v229_v31 = vsel %vm228_vm0, %v227_v25, 0  ;;  %v333_v35 = vsel %vm332_vm1, %v331_v27, 0  ;;  %vm436_vm6 = vcmp.gt.s32.totalorder %v1127_v39, 0  ;;  %p886_p2 = pnand %p885_p0, %p879_p13 }
  0x48   : > { %v230_v32 = vshrl.u32 %v229_v31, 5  ;;  %v231_v33 = vand.u32 31, %v229_v31  ;;  %v335_v36 = vand.u32 31, %v333_v35  ;;  %v1134_v51 = vshrl.u32 %v333_v35, 5 }
  0x4a   : > { %v232_v40 = vsub.s32 32, %v231_v33  ;;  %v234_v42 = vshll.u32 %v947_v41, %v231_v33  ;;  %v237_v44 = vshll.u32 %v948_v43, %v231_v33  ;;  %v240_v46 = vshll.u32 %v949_v45, %v231_v33 }
  0x4b   : > { %v243_v48 = vshll.u32 %v950_v47, %v231_v33  ;;  %v246_v50 = vshll.u32 %v951_v49, %v231_v33  ;;  %vm249_vm2 = vcmp.lt.s32.totalorder %v230_v32, 1  ;;  %vm250_vm3 = vcmp.lt.s32.totalorder %v230_v32, 2 }
  0x4c   : > { %v233_v52 = vshrl.u32 %v947_v41, %v232_v40  ;;  %v235_v53 = vshrl.u32 %v948_v43, %v232_v40  ;;  %v238_v54 = vshrl.u32 %v949_v45, %v232_v40  ;;  %v241_v55 = vshrl.u32 %v950_v47, %v232_v40 }
  0x4d   : > { %v244_v56 = vshrl.u32 %v951_v49, %v232_v40  ;;  %v247_v58 = vshrl.u32 %v952_v57, %v232_v40  ;;  %vm252_vm4 = vcmp.lt.s32.totalorder %v230_v32, 4  ;;  %v336_v62 = vsub.s32 32, %v335_v36 }
  0x4e   : > { %v236_v59 = vor.u32 %v235_v53, %v234_v42  ;;  %v239_v60 = vor.u32 %v238_v54, %v237_v44  ;;  %v242_v61 = vor.u32 %v241_v55, %v240_v46  ;;  %vm251_vm5 = vcmp.lt.s32.totalorder %v230_v32, 3 }
  0x4f   : > { %v245_v63 = vor.u32 %v244_v56, %v243_v48  ;;  %v248_v0 = vor.u32 %v247_v58, %v246_v50  ;;  %v338_v1 = vshll.u32 %v947_v41, %v335_v36  ;;  %v341_v15 = vshll.u32 %v948_v43, %v335_v36 }
  0x50   : > { %v253_v2 = vsel %vm249_vm2, %v233_v52, %v236_v59  ;;  %v254_v3 = vsel %vm252_vm4, %v242_v61, 2102212464  ;;  %v257_v5 = vsel %vm249_vm2, %v236_v59, %v239_v60  ;;  %v261_v6 = vsel %vm249_vm2, %v239_v60, %v242_v61 }
  0x51   : > { %v255_v7 = vsel %vm251_vm5, %v239_v60, %v254_v3  ;;  %v258_v12 = vsel %vm252_vm4, %v245_v63, 920167782  ;;  %v262_v14 = vsel %vm252_vm4, %v248_v0, 1326507024  ;;  %v337_v18 = vshrl.u32 %v947_v41, %v336_v62 }
  0x52   : > { %v259_v16 = vsel %vm251_vm5, %v242_v61, %v258_v12  ;;  %v263_v17 = vsel %vm251_vm5, %v245_v63, %v262_v14  ;;  %v339_v19 = vshrl.u32 %v948_v43, %v336_v62  ;;  %v256_v20 = vsel %vm250_vm3, %v253_v2, %v255_v7 }
  0x53   : > { %v260_v21 = vsel %vm250_vm3, %v257_v5, %v259_v16  ;;  %v264_v22 = vsel %vm250_vm3, %v261_v6, %v263_v17  ;;  %v342_v23 = vshrl.u32 %v949_v45, %v336_v62  ;;  %v344_v33 = vshll.u32 %v949_v45, %v335_v36 }
  0x54   : > { %v1155_v24 = vmul.u32.u64.low %v1119_v34, %v264_v22  ;;  %v1156_v25 = vmul.u32.u64.high %v1119_v34, %v264_v22, %v1155_v24  ;;  %v1159_v26 = vmul.u32.u64.low %v1119_v34, %v260_v21  ;;  %v1160_v27 = vmul.u32.u64.high %v1119_v34, %v260_v21, %v1159_v26 }
  0x55   : > { %v340_v29 = vor.u32 %v339_v19, %v338_v1  ;;  %v343_v31 = vor.u32 %v342_v23, %v341_v15  ;;  %v345_v35 = vshrl.u32 %v950_v47, %v336_v62  ;;  %v347_v32 = vshll.u32 %v950_v47, %v335_v36 }
  0x56   : > { %v348_v40 = vshrl.u32 %v951_v49, %v336_v62  ;;  %v350_v42 = vshll.u32 %v951_v49, %v335_v36  ;;  %v351_v44 = vshrl.u32 %v952_v57, %v336_v62  ;;  %v272_v46 = vmul.u32 %v1119_v34, %v256_v20 }
  0x57   : > { %v346_v48 = vor.u32 %v345_v35, %v344_v33  ;;  %vm353_vm7 = vcmp.lt.s32.totalorder %v1134_v51, 1  ;;  %vm354_vm8 = vcmp.lt.s32.totalorder %v1134_v51, 2  ;;  %vm274_vm9 = vc.u32 %v1156_v25, %v1159_v26 }
  0x58   : > { %v275_v50 = vadd.s32 1, %v1160_v27  ;;  %v349_v52 = vor.u32 %v348_v40, %v347_v32  ;;  %vm355_vm10 = vcmp.lt.s32.totalorder %v1134_v51, 3  ;;  %v352_v53 = vor.u32 %v351_v44, %v350_v42 }
  0x59   : > { %vm356_vm11 = vcmp.lt.s32.totalorder %v1134_v51, 4  ;;  %v357_v36 = vsel %vm353_vm7, %v337_v18, %v340_v29  ;;  %v361_v54 = vsel %vm353_vm7, %v340_v29, %v343_v31  ;;  %v365_v58 = vsel %vm353_vm7, %v343_v31, %v346_v48 }
  0x5a   : > { %v276_v34 = vsel %vm274_vm9, %v275_v50, %v1160_v27  ;;  %v358_v55 = vsel %vm356_vm11, %v346_v48, 2102212464  ;;  %v362_v56 = vsel %vm356_vm11, %v349_v52, 920167782  ;;  %v366_v62 = vsel %vm356_vm11, %v352_v53, 1326507024 }
  0x5b   : > { %v277_v59 = vadd.s32 %v276_v34, %v272_v46  ;;  %v359_v60 = vsel %vm355_vm10, %v343_v31, %v358_v55  ;;  %v363_v61 = vsel %vm355_vm10, %v346_v48, %v362_v56  ;;  %v367_v1 = vsel %vm355_vm10, %v349_v52, %v366_v62 }
  0x5c   : > { %v360_v63 = vsel %vm354_vm8, %v357_v36, %v359_v60  ;;  %v364_v0 = vsel %vm354_vm8, %v361_v54, %v363_v61  ;;  %v437_v2 = vsel %vm436_vm6, %v1127_v39, 0  ;;  %v368_v5 = vsel %vm354_vm8, %v365_v58, %v367_v1 }
  0x5d   : > { %v278_v3 = vadd.s32 536870912, %v277_v59  ;;  %v1188_v6 = vmul.u32.u64.low %v1121_v37, %v364_v0  ;;  %v1189_v7 = vmul.u32.u64.high %v1121_v37, %v364_v0, %v1188_v6  ;;  %v1194_v12 = vadd.f32 %v1096_v4, %v1117_v30 }
  0x5e   : > { %v1197_v14 = vmul.u32.u64.low %v1121_v37, %v368_v5  ;;  %v1198_v15 = vmul.u32.u64.high %v1121_v37, %v368_v5, %v1197_v14  ;;  %v433_v39 = vor.u32 8388608, %v1125_v38  ;;  %v439_v17 = vand.u32 31, %v437_v2 }
  0x5f   : > { %v279_v16 = vshrl.u32 %v278_v3, 30  ;;  %v376_v51 = vmul.u32 %v1121_v37, %v360_v63  ;;  %v379_v19 = vadd.s32 1, %v1189_v7  ;;  %v529_v4 = vand.u32 2147483647, %v1194_v12 }
  0x60   : > { %v440_v20 = vsub.s32 32, %v439_v17  ;;  %vm378_vm12 = vc.u32 %v1198_v15, %v1188_v6  ;;  %v532_v30 = vand.u32 2139095040, %v1194_v12  ;;  %v1211_v22 = vshrl.u32 %v437_v2, 5 }
  0x61   : > { %v280_v18 = vshll.u32 %v279_v16, 30  ;;  %v380_v38 = vsel %vm378_vm12, %v379_v19, %v1189_v7  ;;  %v1213_v37 = vshll.u32 %v433_v39, 8  ;;  %v442_v24 = vshll.u32 %v947_v41, %v439_v17 }
  0x62   : > { %v381_v23 = vadd.s32 %v380_v38, %v376_v51  ;;  %v443_v27 = vshrl.u32 %v948_v43, %v440_v20  ;;  %v445_v29 = vshll.u32 %v948_v43, %v439_v17  ;;  %v446_v33 = vshrl.u32 %v949_v45, %v440_v20 }
  0x63   : > { %v1208_v21 = vsub.s32 %v277_v59, %v280_v18  ;;  %v448_v35 = vshll.u32 %v949_v45, %v439_v17  ;;  %v449_v32 = vshrl.u32 %v950_v47, %v440_v20  ;;  %v273_v40 = vadd.s32 %v1159_v26, %v1156_v25 }
  0x64   : > { %v382_v42 = vadd.s32 536870912, %v381_v23  ;;  %v451_v44 = vshll.u32 %v950_v47, %v439_v17  ;;  %v533_v46 = vshrl.u32 %v532_v30, 23  ;;  %v303_v50 = vsub.s32 4, %v279_v16 }
  0x65   : > { %v283_v31 = vsub.s32 0, %v1208_v21  ;;  %v452_v52 = vshrl.u32 %v951_v49, %v440_v20  ;;  %vm460_vm14 = vcmp.lt.s32.totalorder %v1211_v22, 4  ;;  %v441_v36 = vshrl.u32 %v947_v41, %v440_v20 }
  0x66   : > { %v1228_v53 = vshrl.u32 %v382_v42, 30  ;;  %v454_v54 = vshll.u32 %v951_v49, %v439_v17  ;;  %v455_v34 = vshrl.u32 %v952_v57, %v440_v20  ;;  %v444_v55 = vor.u32 %v443_v27, %v442_v24 }
  0x67   : > { %v736_v48 = vmin.u32 %v283_v31, %v1208_v21  ;;  %v447_v56 = vor.u32 %v446_v33, %v445_v29  ;;  %v450_v58 = vor.u32 %v449_v32, %v448_v35  ;;  %v453_v60 = vor.u32 %v452_v52, %v451_v44 }
  0x68   : > { %v384_v59 = vshll.u32 %v1228_v53, 30  ;;  %vm457_vm0 = vcmp.lt.s32.totalorder %v1211_v22, 1  ;;  %vm459_vm1 = vcmp.lt.s32.totalorder %v1211_v22, 3  ;;  %v456_v62 = vor.u32 %v455_v34, %v454_v54 }
  0x69   : > { %v285_v26 = vclz %v736_v48  ;;  %v462_v63 = vsel %vm460_vm14, %v450_v58, 2102212464  ;;  %v747_v11 = vadd.s32 4294967169, %v533_v46  ;;  %v304_v0 = vsel %vm219_vm13, %v303_v50, %v279_v16 }
  0x6a   : > { %v1246_v1 = vsub.s32 %v381_v23, %v384_v59  ;;  %vm458_vm2 = vcmp.lt.s32.totalorder %v1211_v22, 2  ;;  %v466_v2 = vsel %vm460_vm14, %v453_v60, 920167782  ;;  %v461_v3 = vsel %vm457_vm0, %v441_v36, %v444_v55 }
  0x6b   : > { %v737_v61 = vadd.s32 4294967294, %v285_v26  ;;  %v465_v5 = vsel %vm457_vm0, %v444_v55, %v447_v56  ;;  %v467_v7 = vsel %vm459_vm1, %v450_v58, %v466_v2  ;;  %v463_v39 = vsel %vm459_vm1, %v447_v56, %v462_v63 }
  0x6c   : > { %v387_v16 = vsub.s32 0, %v1246_v1  ;;  %v469_v17 = vsel %vm457_vm0, %v447_v56, %v450_v58  ;;  %v470_v20 = vsel %vm460_vm14, %v456_v62, 1326507024  ;;  %v468_v38 = vsel %vm458_vm2, %v465_v5, %v467_v7 }
  0x6d   : > { %vm738_vm3 = vcmp.lt.s32.totalorder %v737_v61, 0  ;;  %v471_v23 = vsel %vm459_vm1, %v453_v60, %v470_v20  ;;  %v1272_v24 = vand.u32 8388607, %v529_v4  ;;  %v539_v31 = vadd.s32 1, %v747_v11 }
  0x6e   : > { %v288_v14 = vsel %vm738_vm3, 0, %v737_v61  ;;  %v740_v30 = vmin.u32 %v387_v16, %v1246_v1  ;;  %v306_v33 = vsel %vm1235_vm15, 0, %v304_v0  ;;  %v464_v32 = vsel %vm458_vm2, %v461_v3, %v463_v39 }
  0x6f   : > { %v289_v51 = vsub.s32 32, %v288_v14  ;;  %v290_v18 = vshll.u32 %v1208_v21, %v288_v14  ;;  %v293_v19 = vsub.s32 4294967266, %v288_v14  ;;  %v472_v21 = vsel %vm458_vm2, %v469_v17, %v471_v23 }
  0x70   : > { %v389_v35 = vclz %v740_v30  ;;  %v1281_v46 = vmul.u32.u64.low %v1213_v37, %v472_v21  ;;  %v1282_v48 = vmul.u32.u64.high %v1213_v37, %v472_v21, %v1281_v46  ;;  %vm540_vm4 = vcmp.gt.s32.totalorder %v539_v31, 0 }
  0x71   : > { %v291_v27 = vshrl.u32 %v273_v40, %v289_v51  ;;  %v294_v29 = vadd.s32 127, %v293_v19  ;;  %v1285_v40 = vmul.u32.u64.low %v1213_v37, %v468_v38  ;;  %v1286_v52 = vmul.u32.u64.high %v1213_v37, %v468_v38, %v1285_v40 }
  0x72   : > { %v741_v50 = vadd.s32 4294967294, %v389_v35  ;;  %v537_v34 = vor.u32 8388608, %v1272_v24  ;;  %v541_v26 = vsel %vm540_vm4, %v539_v31, 0  ;;  %v1290_v22 = vadd.s32 3, %v306_v33 }
  0x73   : > { %v292_v42 = vor.u32 %v291_v27, %v290_v18  ;;  %v295_v44 = vshll.u32 %v294_v29, 23  ;;  %v377_v55 = vadd.s32 %v1188_v6, %v1198_v15  ;;  %v543_v56 = vand.u32 31, %v541_v26 }
  0x74   : > { %vm742_vm5 = vcmp.lt.s32.totalorder %v741_v50, 0  ;;  %v480_v60 = vmul.u32 %v1213_v37, %v464_v32  ;;  %vm482_vm6 = vc.u32 %v1282_v48, %v1285_v40  ;;  %vm323_vm7 = vcmp.lt.s32.totalorder %v1102_v9, 0 }
  0x75   : > { %v296_v36 = vor.u32 4788187, %v295_v44  ;;  %v299_v54 = vcvt.s32.f32 %v292_v42  ;;  %v392_v59 = vsel %vm742_vm5, 0, %v741_v50  ;;  %v483_v11 = vadd.s32 1, %v1286_v52 }
  0x76   : > { %v393_v61 = vsub.s32 32, %v392_v59  ;;  %v394_v62 = vshll.u32 %v1246_v1, %v392_v59  ;;  %v397_v63 = vsub.s32 4294967266, %v392_v59  ;;  %v407_v6 = vsub.s32 4, %v1228_v53 }
  0x77   : > { %v297_v58 = vand.u32 2147483647, %v296_v36  ;;  %v1301_v15 = vshrl.u32 %v541_v26, 5  ;;  %v544_v2 = vsub.s32 32, %v543_v56  ;;  %v484_v37 = vsel %vm482_vm6, %v483_v11, %v1286_v52 }
  0x78   : > { %v395_v3 = vshrl.u32 %v377_v55, %v393_v61  ;;  %v398_v5 = vadd.s32 127, %v397_v63  ;;  %v546_v7 = vshll.u32 %v947_v41, %v543_v56  ;;  %v485_v16 = vadd.s32 %v484_v37, %v480_v60 }
  0x79   : > { %v300_v0 = vmul.f32 %v299_v54, %v297_v58  ;;  %v547_v39 = vshrl.u32 %v948_v43, %v544_v2  ;;  %v549_v1 = vshll.u32 %v948_v43, %v543_v56  ;;  %vm1309_vm8 = vcmp.le.f32.partialorder %v321_v13, 0.7853982 }
  0x7a   : > { %v396_v51 = vor.u32 %v395_v3, %v394_v62  ;;  %v399_v18 = vshll.u32 %v398_v5, 23  ;;  %v550_v19 = vshrl.u32 %v949_v45, %v544_v2  ;;  %v552_v20 = vshll.u32 %v949_v45, %v543_v56 }
  0x7b   : > { %v301_v14 = vxor.u32 2147483648, %v300_v0  ;;  %v486_v38 = vadd.s32 536870912, %v485_v16  ;;  %v553_v23 = vshrl.u32 %v950_v47, %v544_v2  ;;  %v555_v43 = vshll.u32 %v950_v47, %v543_v56 }
  0x7c   : > { %v400_v24 = vor.u32 4788187, %v399_v18  ;;  %v403_v27 = vcvt.s32.f32 %v396_v51  ;;  %v548_v29 = vor.u32 %v547_v39, %v546_v7  ;;  %v551_v31 = vor.u32 %v550_v19, %v549_v1 }
  0x7d   : > { %v302_v30 = vsel %vm219_vm13, %v301_v14, %v300_v0  ;;  %v1322_v21 = vshrl.u32 %v486_v38, 30  ;;  %v556_v45 = vshrl.u32 %v951_v49, %v544_v2  ;;  %v558_v35 = vshll.u32 %v951_v49, %v543_v56 }
  0x7e   : > { %v305_v13 = vsel %vm1235_vm15, %v1099_v8, %v302_v30  ;;  %v401_v33 = vand.u32 2147483647, %v400_v24  ;;  %v559_v32 = vshrl.u32 %v952_v57, %v544_v2  ;;  %v408_v47 = vsel %vm323_vm7, %v407_v6, %v1228_v53 }
  0x7f   : > { %830 = vcosq.f32 %v305_v13  ;;  %v488_v25 = vshll.u32 %v1322_v21, 30  ;;  %v557_v42 = vor.u32 %v556_v45, %v555_v43  ;;  %vm561_vm9 = vcmp.lt.s32.totalorder %v1301_v15, 1 }
  0x80   : > { %832 = vsinq.f32 %v305_v13  ;;  %v404_v44 = vmul.f32 %v403_v27, %v401_v33  ;;  %v545_v46 = vshrl.u32 %v947_v41, %v544_v2  ;;  %v554_v50 = vor.u32 %v553_v23, %v552_v20 }
  0x81   : > { %v1333_v52 = vshll.u32 %v537_v34, 8  ;;  %v1335_v36 = vsub.s32 %v485_v16, %v488_v25  ;;  %v560_v49 = vor.u32 %v559_v32, %v558_v35  ;;  %vm563_vm10 = vcmp.lt.s32.totalorder %v1301_v15, 3 }
  0x82   : > { %vm564_vm11 = vcmp.lt.s32.totalorder %v1301_v15, 4  ;;  %v405_v57 = vxor.u32 2147483648, %v404_v44  ;;  %vm562_vm12 = vcmp.lt.s32.totalorder %v1301_v15, 2  ;;  %v569_v54 = vsel %vm561_vm9, %v548_v29, %v551_v31 }
  0x83   : > { %v566_v53 = vsel %vm564_vm11, %v554_v50, 2102212464  ;;  %v311_v41 = vand.u32 3, %v1290_v22  ;;  %v410_v34 = vsel %vm1309_vm8, 0, %v408_v47  ;;  %v491_v26 = vsub.s32 0, %v1335_v36 }
  0x84   : > { %v570_v55 = vsel %vm564_vm11, %v557_v42, 920167782  ;;  %v406_v56 = vsel %vm323_vm7, %v405_v57, %v404_v44  ;;  %v565_v58 = vsel %vm561_vm9, %v545_v46, %v548_v29  ;;  %v567_v59 = vsel %vm563_vm10, %v551_v31, %v566_v53 }
  0x85   : > { %v571_v22 = vsel %vm563_vm10, %v554_v50, %v570_v55  ;;  %v409_v60 = vsel %vm1309_vm8, %v1102_v9, %v406_v56  ;;  %v744_v61 = vmin.u32 %v491_v26, %v1335_v36  ;;  %v573_v63 = vsel %vm561_vm9, %v551_v31, %v554_v50 }
  0x86   : > { %v572_v62 = vsel %vm562_vm12, %v569_v54, %v571_v22  ;;  %834 = vcosq.f32 %v409_v60  ;;  %v574_v11 = vsel %vm564_vm11, %v560_v49, 1326507024  ;;  %vm312_vm13 = vcmp.lt.s32.totalorder %v311_v41, 2 }
  0x87   : > { %v1369_v0 = vmul.u32.u64.low %v1333_v52, %v572_v62  ;;  %v1370_v6 = vmul.u32.u64.high %v1333_v52, %v572_v62, %v1369_v0  ;;  %vm316_vm14 = vcmp.eq.s32.totalorder %v311_v41, 2  ;;  %836 = vsinq.f32 %v409_v60 }
  0x88   : > { %v493_v3 = vclz %v744_v61  ;;  %vm313_vm15 = vcmp.eq.s32.totalorder %v311_v41, 0  ;;  %v414_v7 = vadd.s32 3, %v410_v34  ;;  %v575_v14 = vsel %vm563_vm10, %v557_v42, %v574_v11 }
  0x89   : > { %v831_v2 = vpop.eup %830  ;;  %v568_v1 = vsel %vm562_vm12, %v565_v58, %v567_v59  ;;  %v576_v17 = vsel %vm562_vm12, %v573_v63, %v575_v14  ;;  %vm309_vm0 = vweird.f32 %v1099_v8  ;;  %v481_v30 = vadd.s32 %v1285_v40, %v1282_v48 }
  0x8a   : > { %v833_v5 = vpop.eup %832  ;;  %v317_v37 = vxor.u32 2147483648, %v831_v2  ;;  %v745_v39 = vadd.s32 4294967294, %v493_v3  ;;  %v1381_v18 = vmul.u32.u64.low %v1333_v52, %v576_v17  ;;  %v1382_v19 = vmul.u32.u64.high %v1333_v52, %v576_v17, %v1381_v18 }
  0x8b   : > { %v314_v16 = vxor.u32 2147483648, %v833_v5  ;;  %v587_v38 = vadd.s32 1, %v1370_v6  ;;  %v415_v43 = vand.u32 3, %v414_v7  ;;  %v584_v13 = vmul.u32 %v1333_v52, %v568_v1 }
  0x8c   : > { %v318_v51 = vsel %vm316_vm14, %v317_v37, %v833_v5  ;;  %vm746_vm1 = vcmp.lt.s32.totalorder %v745_v39, 0  ;;  %vm586_vm2 = vc.u32 %v1382_v19, %v1369_v0  ;;  %vm413_vm6 = vweird.f32 %v1102_v9 }
  0x8d   : > { %v315_v20 = vsel %vm313_vm15, %v831_v2, %v314_v16  ;;  %v496_v15 = vsel %vm746_vm1, 0, %v745_v39  ;;  %v588_v31 = vsel %vm586_vm2, %v587_v38, %v1370_v6  ;;  %vm420_vm3 = vcmp.eq.s32.totalorder %v415_v43, 2 }
  0x8e   : > { %v319_v23 = vsel %vm312_vm13, %v315_v20, %v318_v51  ;;  %v497_v24 = vsub.s32 32, %v496_v15  ;;  %v498_v27 = vshll.u32 %v1335_v36, %v496_v15  ;;  %v501_v29 = vsub.s32 4294967266, %v496_v15 }
  0x8f   : > { %v320_v8 = vsel %vm309_vm0, nan, %v319_v23  ;;  %v589_v33 = vadd.s32 %v588_v31, %v584_v13  ;;  %vm417_vm4 = vcmp.eq.s32.totalorder %v415_v43, 0  ;;  %vm416_vm5 = vcmp.lt.s32.totalorder %v415_v43, 2 }
  0x90   : > { %633 = vst [vmem:[%s1394_s23] sm:$0xff] %v320_v8  ;;  %v499_v48 = vshrl.u32 %v481_v30, %v497_v24  ;;  %v502_v40 = vadd.s32 127, %v501_v29  ;;  %v835_v45 = vpop.eup %834  ;;  %v511_v54 = vsub.s32 4, %v1322_v21  ;;  %vm427_vm7 = vcmp.lt.s32.totalorder %v1105_v10, 0 }
  0x91   : > { %v837_v35 = vpop.eup %836  ;;  %v421_v32 = vxor.u32 2147483648, %v835_v45  ;;  %v590_v44 = vadd.s32 536870912, %v589_v33  ;;  %vm426_vm8 = vcmp.le.f32.partialorder %v425_v28, 0.7853982  ;;  %v585_v6 = vadd.s32 %v1369_v0, %v1382_v19 }
  0x92   : > { %v500_v47 = vor.u32 %v499_v48, %v498_v27  ;;  %v503_v25 = vshll.u32 %v502_v40, 23  ;;  %v418_v42 = vxor.u32 2147483648, %v837_v35  ;;  %v512_v56 = vsel %vm427_vm7, %v511_v54, %v1322_v21 }
  0x93   : > { %v422_v46 = vsel %vm420_vm3, %v421_v32, %v837_v35  ;;  %v591_v49 = vshrl.u32 %v590_v44, 30  ;;  %v514_v60 = vsel %vm426_vm8, 0, %v512_v56  ;;  %vm517_vm13 = vweird.f32 %v1105_v10 }
  0x94   : > { %v504_v50 = vor.u32 4788187, %v503_v25  ;;  %v507_v52 = vcvt.s32.f32 %v500_v47  ;;  %v419_v36 = vsel %vm417_vm4, %v835_v45, %v418_v42  ;;  %v518_v63 = vadd.s32 3, %v514_v60 }
  0x95   : > { %v423_v57 = vsel %vm416_vm5, %v419_v36, %v422_v46  ;;  %v592_v34 = vshll.u32 %v591_v49, 30  ;;  %v615_v23 = vsub.s32 4, %v591_v49  ;;  %vm531_vm14 = vcmp.lt.s32.totalorder %v1194_v12, 0 }
  0x96   : > { %v505_v53 = vand.u32 2147483647, %v504_v50  ;;  %v424_v41 = vsel %vm413_vm6, nan, %v423_v57  ;;  %v519_v2 = vand.u32 3, %v518_v63  ;;  %vm530_vm15 = vcmp.le.f32.partialorder %v529_v4, 0.7853982 }
  0x97   : > { %634 = vst [vmem:[%s1394_s23 + $0x8] sm:$0xff] %v424_v41  ;;  %v593_v55 = vsub.s32 %v589_v33, %v592_v34  ;;  %v616_v8 = vsel %vm531_vm14, %v615_v23, %v591_v49  ;;  %vm621_vm3 = vweird.f32 %v1194_v12 }
  0x98   : > { %v508_v26 = vmul.f32 %v507_v52, %v505_v53  ;;  %vm524_vm10 = vcmp.eq.s32.totalorder %v519_v2, 2  ;;  %vm521_vm11 = vcmp.eq.s32.totalorder %v519_v2, 0  ;;  %vm520_vm12 = vcmp.lt.s32.totalorder %v519_v2, 2 }
  0x99   : > { %v595_v58 = vsub.s32 0, %v593_v55  ;;  %v618_v27 = vsel %vm530_vm15, 0, %v616_v8 }
  0x9a   : > { %v509_v9 = vxor.u32 2147483648, %v508_v26  ;;  %v622_v29 = vadd.s32 3, %v618_v27 }
  0x9b   : > { %v748_v61 = vmin.u32 %v595_v58, %v593_v55 }
  0x9c   : > { %v510_v59 = vsel %vm427_vm7, %v509_v9, %v508_v26  ;;  %v623_v48 = vand.u32 3, %v622_v29 }
  0x9d   : > { %v513_v22 = vsel %vm426_vm8, %v1105_v10, %v510_v59  ;;  %v597_v62 = vclz %v748_v61 }
  0x9e   : > { %838 = vcosq.f32 %v513_v22  ;;  %vm628_vm0 = vcmp.eq.s32.totalorder %v623_v48, 2  ;;  %vm625_vm1 = vcmp.eq.s32.totalorder %v623_v48, 0  ;;  %vm624_vm2 = vcmp.lt.s32.totalorder %v623_v48, 2 }
  0x9f   : > { %840 = vsinq.f32 %v513_v22  ;;  %v749_v11 = vadd.s32 4294967294, %v597_v62 }
  0xa1   : > { %vm750_vm9 = vcmp.lt.s32.totalorder %v749_v11, 0 }
  0xa2   : > { %v600_v28 = vsel %vm750_vm9, 0, %v749_v11 }
  0xa3   : > { %v601_v3 = vsub.s32 32, %v600_v28  ;;  %v602_v5 = vshll.u32 %v593_v55, %v600_v28  ;;  %v605_v21 = vsub.s32 4294967266, %v600_v28 }
  0xa5   : > { %v603_v37 = vshrl.u32 %v585_v6, %v601_v3  ;;  %v606_v7 = vadd.s32 127, %v605_v21 }
  0xa7   : > { %v604_v1 = vor.u32 %v603_v37, %v602_v5  ;;  %v607_v17 = vshll.u32 %v606_v7, 23 }
  0xa8   : > { %v839_v14 = vpop.eup %838 }
  0xa9   : > { %v841_v16 = vpop.eup %840  ;;  %v525_v39 = vxor.u32 2147483648, %v839_v14  ;;  %v608_v18 = vor.u32 4788187, %v607_v17  ;;  %v611_v19 = vcvt.s32.f32 %v604_v1 }
  0xaa   : > { %v522_v51 = vxor.u32 2147483648, %v841_v16 }
  0xab   : > { %v526_v0 = vsel %vm524_vm10, %v525_v39, %v841_v16  ;;  %v609_v38 = vand.u32 2147483647, %v608_v18 }
  0xac   : > { %v523_v20 = vsel %vm521_vm11, %v839_v14, %v522_v51 }
  0xad   : > { %v527_v30 = vsel %vm520_vm12, %v523_v20, %v526_v0  ;;  %v612_v15 = vmul.f32 %v611_v19, %v609_v38 }
  0xae   : > { %v528_v43 = vsel %vm517_vm13, nan, %v527_v30 }
  0xaf   : > { %635 = vst [vmem:[%s1394_s23 + $0x10] sm:$0xff] %v528_v43  ;;  %v613_v13 = vxor.u32 2147483648, %v612_v15 }
  0xb1   : > { %v614_v10 = vsel %vm531_vm14, %v613_v13, %v612_v15 }
  0xb2   : > { %v617_v24 = vsel %vm530_vm15, %v1194_v12, %v614_v10 }
  0xb3   : > { %842 = vcosq.f32 %v617_v24 }
  0xb4   : > { %844 = vsinq.f32 %v617_v24 }
  0xbd   : > { %v843_v40 = vpop.eup %842 }
  0xbe   : > { %v845_v31 = vpop.eup %844  ;;  %v629_v45 = vxor.u32 2147483648, %v843_v40 }
  0xbf   : > { %v626_v4 = vxor.u32 2147483648, %v845_v31 }
  0xc0   : > { %v630_v33 = vsel %vm628_vm0, %v629_v45, %v845_v31 }
  0xc1   : > { %v627_v35 = vsel %vm625_vm1, %v843_v40, %v626_v4 }
  0xc2   : > { %v631_v32 = vsel %vm624_vm2, %v627_v35, %v630_v33 }
  0xc3   : > { %v632_v47 = vsel %vm621_vm3, nan, %v631_v32 }
  0xc4   : > { %636 = vst [vmem:[%s1394_s23 + $0x18] sm:$0xff] %v632_v47 }
  0xc5   : > { %889 = shalt.err (!%p886_p2)
}
  0xc6   : > { %s890_s9 = scalar_lea.hbm %s1420_s26, 512  ;;  %s894_s4 = scalar_lea.hbm %s1470_s3, 1024 }
  0xc7   : > { %p891_p4 = scmp.ne.s32.totalorder %s1420_s26, %s890_s9  ;;  %p895_p9 = scmp.lt.u32.totalorder %s1420_s26, %s1470_s3 }
  0xc8   : > { %p896_p1 = scmp.lt.u32.totalorder %s894_s4, %s890_s9  ;;  %p898_p6 = scmp.lt.u32.totalorder %s890_s9, %s1420_s26 }
  0xc9   : > { %p892_p5 = pnand %p891_p4, %p1481_p11 }
  0xca   : > { %p897_p3 = por %p896_p1, %p895_p9 }
  0xcb   : > { %p893_p7 = pneg %p892_p5 }
  0xcc   : > { %p899_p12 = por %p898_p6, %p897_p3 }
  0xce   : > { %p900_p13 = pnand %p899_p12, %p893_p7 }
  0xd0   : > { %903 = shalt.err (!%p900_p13)
}
  0xd1   : > { %s954_s8 = smov 128   ;;  %s955_s23 = smov 8  }
  0xd2   : > { %776 = dma.vmem_to_hbm [thread:$0]  (%p1481_p11), %s1422_s19, 512, %s1420_s26, %s638_s16, %s954_s8, %s954_s8, %s955_s23  }
  0xd3 PF: > { %s666_s17 = sand.u32 1, %s930_s12   ;;  %p1482_p8 = scmp.ne.s32.totalorder %s1475_s25, 0 }
  0xd4   : > { %p1483_p10 = scmp.ge.s32.totalorder %s942_s15, 2  ;;  %s667_s20 = scalar_lea.sflag [#allocation4], %s666_s17 }
  0xd6   : > { %p783_p0 = pnand %p1483_p10, %p1482_p8 }
  0xd8   : > { %925 = dma.done.wait (!%p783_p0), %s667_s20, 512  }
  0xd9   : > { %927 = vsyncadd (!%p783_p0), %s667_s20, 4294966784  ;;  %p16_p2 = scmp.ge.s32.totalorder %s1001_s18, 4   ;;  %s1484_s12 = smov %s934_s13 }
  0xda   : > { %s1485_s13 = smov %s938_s14  ;;  %s1486_s14 = smov %s1013_s21 }
  0xdb   : > { %s1487_s15 = smov %s1001_s18  ;;  %18 = sbr.rel (!%p16_p2) target bundleno = 5 (0x5), region = 77 }
  0xe2   :  { %672 = vsyncpa [#allocation3], 1 }
  0xe3   :  { %674 = vsyncpa [#allocation3 + $0x1], 1 }
  0xe4   :  { %675 = vsyncpa [#allocation4], 1 }
  0xe5   :  { %677 = vsyncpa [#allocation4 + $0x1], 1 }

</bundles_post_ra>
